<compile_context>
chip_gen: v6e
topology: v6e:2x2x1
jax: 0.10.0
libtpu: 0.0.40
codegen_flags: <defaults>
</compile_context>

<pallas_src>
import functools

import jax
import jax.numpy as jnp
from jax import lax
from jax.experimental import pallas as pl
from jax.experimental.pallas import tpu as pltpu


def _round_up(v, m):
    return ((v + m - 1) // m) * m


# ---------------------------------------------------------------------------
# Fused Pallas kernel (single grid step, all batches)
# ---------------------------------------------------------------------------

def _make_kernel(*, cin, cin_pad, inner_pad, outer, k, s, l_down, lq, l_up,
                 lpad, ml, d_vals, n_batch, b_pass, u0_pass, dot_dtype,
                 eps=1e-5):
    """All sizes are static Python ints; loops below fully unroll."""
    inv_count = 1.0 / float(n_batch * l_up)   # BN averages over N * L_up

    def kernel(x_ref, w1_ref, w2_ref, gamma_ref, beta_ref, mask_ref, out_ref,
               lrelu_scr, p_scr, ypad_scr, pr_scr):
        # ---- LeakyReLU(0.2) ONCE over the whole (N, s, cin_pad, lu) block --
        xv = x_ref[...]
        lrelu_scr[...] = jnp.where(xv >= 0.0, xv, 0.2 * xv)

        # ---- down path: batched tap matrix -> ONE GEMM ---------------------
        # p_scr row groups are cin_pad (=8k)-aligned -> unmasked sublane stores
        for dk in range(k):
            a, b = dk // s, dk % s
            for n in range(n_batch):
                p_scr[dk * cin_pad:(dk + 1) * cin_pad,
                      n * l_down:(n + 1) * l_down] = lrelu_scr[n, b, :,
                                                               a:a + l_down]
        y1 = jnp.dot(w1_ref[...], p_scr[...].astype(dot_dtype),
                     preferred_element_type=jnp.float32)   # (inner_pad, N*l_down)
        y1 = jnp.maximum(y1, 0.0)                          # uprelu, f32

        # ---- up path: zero-margined y1 -> ONE merged polyphase GEMM --------
        ypad_scr[...] = jnp.zeros_like(ypad_scr)           # once per call
        for n in range(n_batch):
            ypad_scr[:, n * lpad + ml:n * lpad + ml + l_down] = (
                y1[:, n * l_down:(n + 1) * l_down])
        for q, d in enumerate(d_vals):                     # deduplicated shifts
            st = ml + d                                    # static, >= 0
            for n in range(n_batch):
                pr_scr[q * inner_pad:(q + 1) * inner_pad,
                       n * lq:(n + 1) * lq] = ypad_scr[:, n * lpad + st:
                                                       n * lpad + st + lq]
        f_all = jnp.dot(w2_ref[...], pr_scr[...].astype(dot_dtype),
                        preferred_element_type=jnp.float32)  # (s*outer, N*lq)

        # ---- BatchNorm1d training stats: true two-pass (f is in-register) --
        mask = mask_ref[...]                               # 1.0 on valid cols
        fm = f_all * mask
        row_sum = jnp.sum(fm, axis=1, keepdims=True)       # (s*outer, 1)
        ch_sum = row_sum[0:outer]
        for r in range(1, s):
            ch_sum = ch_sum + row_sum[r * outer:(r + 1) * outer]
        mean = ch_sum * inv_count                          # (outer, 1)
        mean_rows = jnp.concatenate([mean] * s, axis=0)    # (s*outer, 1)
        cen = (f_all - mean_rows) * mask
        row_ssq = jnp.sum(cen * cen, axis=1, keepdims=True)
        ch_ssq = row_ssq[0:outer]
        for r in range(1, s):
            ch_ssq = ch_ssq + row_ssq[r * outer:(r + 1) * outer]
        inv_std = lax.rsqrt(ch_ssq * inv_count + eps)      # EUP
        scale = gamma_ref[...] * inv_std                   # folded affine
        shift = beta_ref[...] - mean * scale
        f_norm = (f_all * jnp.concatenate([scale] * s, axis=0)
                  + jnp.concatenate([shift] * s, axis=0))  # one FMA per elem

        # ---- channel concat [x, f] assembled in-register, ONE store --------
        # Columns beyond the valid length (s*u + r >= L) hold junk that the
        # wrapper's final [:, :, :L] trim discards.
        blocks = []
        for n in range(n_batch):
            xpass = jnp.concatenate(
                [x_ref[n, b_pass[r], :cin, u0_pass[r]:u0_pass[r] + lq]
                 for r in range(s)], axis=1)               # (cin, s*lq)
            fpart = jnp.concatenate(
                [f_norm[r * outer:(r + 1) * outer, n * lq:(n + 1) * lq]
                 for r in range(s)], axis=1)               # (outer, s*lq)
            blocks.append(jnp.concatenate([xpass, fpart], axis=0))
        out_ref[...] = jnp.concatenate(blocks, axis=0)     # (N*(cin+outer), s*lq)

    return kernel


# ---------------------------------------------------------------------------
# Wrapper: layout prep (phase split), weight packing, pallas_call, phase merge
# ---------------------------------------------------------------------------

@functools.partial(jax.jit, static_argnames=("k_size", "stride", "padding",
                                             "transpose", "dot_dtype"))
def unet_block_innermost(x, w_down, w_up, gamma, beta, *, k_size, stride,
                         padding, transpose, dot_dtype=jnp.bfloat16):
    N, cin, L = x.shape
    inner = w_down.shape[0]
    outer = w_up.shape[1]
    kt = k_size + 1
    s = stride

    l_down = (L + 2 * padding - k_size) // s + 1
    l_up = (l_down - 1) * s - 2 * transpose + kt
    if l_up != L:
        raise ValueError(
            f"ConvTranspose1d output length {l_up} != input length {L}; "
            "torch.cat([x, f], 1) would fail for this configuration.")

    # ---- static geometry ---------------------------------------------------
    lq = -(-l_up // s)                               # per-phase output length
    a_dn = (k_size - 1) // s                         # down-conv tap reach
    lu = max(a_dn + l_down,                          # down-conv slice reach
             (padding + s - 1) // s + lq,            # x-passthrough reach
             -(-(padding + L) // s))                 # non-negative right pad
    a_up = -(-kt // s)                               # taps per output phase
    c0 = tuple((r + transpose) // s for r in range(s))
    r2 = tuple((r + transpose) % s for r in range(s))
    # deduplicated y1-relative shift set for the merged polyphase up-GEMM
    d_vals = tuple(sorted({c0[r] - a for r in range(s) for a in range(a_up)
                           if s * a + r2[r] < kt}))
    n_shift = len(d_vals)
    ml = max(0, -min(d_vals))                        # left zero margin of y1pad
    mr = max(0, max(d_vals) + lq - l_down)           # right zero margin
    lpad = ml + l_down + mr

    cin_pad = _round_up(cin, 8)                      # sublane-aligned tap rows
    inner_pad = _round_up(inner, 8)
    c_tot = cin + outer

    b_pass = tuple((r + padding) % s for r in range(s))
    u0_pass = tuple((r + padding) // s for r in range(s))

    # ---- XLA-side layout prep (single cheap passes, no inflation) ----------
    xp = jnp.pad(x, ((0, 0), (0, cin_pad - cin),
                     (padding, s * lu - padding - L)))
    # x_ps[n, b, ci, u] = xp[n, ci, s*u + b]
    x_ps = xp.reshape(N, cin_pad, lu, s).transpose(0, 3, 1, 2)  # (N,s,cin_pad,lu)

    # Conv1d weight as (inner_pad, k*cin_pad) GEMM matrix (tap-major, ch-minor)
    w1 = jnp.pad(w_down, ((0, inner_pad - inner), (0, cin_pad - cin), (0, 0)))
    w1 = w1.transpose(0, 2, 1).reshape(inner_pad, k_size * cin_pad).astype(dot_dtype)

    # Merged polyphase ConvTranspose1d weight:
    #   W2[r*outer+oc, q*inner_pad+ic] = w_up[ic, oc, s*a + r2[r]]
    #   where a = c0[r] - d_vals[q] (zero if that tap does not exist).
    w2s = jnp.zeros((s, outer, n_shift, inner_pad), jnp.float32)
    for r in range(s):
        for a in range(a_up):
            m = s * a + r2[r]
            if m < kt:
                q = d_vals.index(c0[r] - a)
                w2s = w2s.at[r, :, q, :inner].set(w_up[:, :, m].T)
    w2s = w2s.reshape(s * outer, n_shift * inner_pad).astype(dot_dtype)

    gamma2 = gamma.reshape(outer, 1).astype(jnp.float32)
    beta2 = beta.reshape(outer, 1).astype(jnp.float32)

    # validity mask over (phase, channel, batch, position) -> (s*outer, N*lq)
    valid = (jnp.arange(lq)[None, :] * s + jnp.arange(s)[:, None]) < l_up
    mask = jnp.broadcast_to(valid[:, None, None, :], (s, outer, N, lq))
    mask = mask.reshape(s * outer, N * lq).astype(jnp.float32)

    kernel = _make_kernel(cin=cin, cin_pad=cin_pad, inner_pad=inner_pad,
                          outer=outer, k=k_size, s=s, l_down=l_down, lq=lq,
                          l_up=l_up, lpad=lpad, ml=ml, d_vals=d_vals,
                          n_batch=N, b_pass=b_pass, u0_pass=u0_pass,
                          dot_dtype=dot_dtype)

    out2 = pl.pallas_call(
        kernel,
        out_shape=jax.ShapeDtypeStruct((N * c_tot, s * lq), jnp.float32),
        grid=(1,),                                   # everything in one step
        in_specs=[
            pl.BlockSpec((N, s, cin_pad, lu), lambda i: (0, 0, 0, 0)),
            pl.BlockSpec((inner_pad, k_size * cin_pad), lambda i: (0, 0)),
            pl.BlockSpec((s * outer, n_shift * inner_pad), lambda i: (0, 0)),
            pl.BlockSpec((outer, 1), lambda i: (0, 0)),
            pl.BlockSpec((outer, 1), lambda i: (0, 0)),
            pl.BlockSpec((s * outer, N * lq), lambda i: (0, 0)),
        ],
        out_specs=pl.BlockSpec((N * c_tot, s * lq), lambda i: (0, 0)),
        scratch_shapes=[
            pltpu.VMEM((N, s, cin_pad, lu), jnp.float32),            # lrelu(x)
            pltpu.VMEM((k_size * cin_pad, N * l_down), jnp.float32),  # down taps
            pltpu.VMEM((inner_pad, N * lpad), jnp.float32),           # margined y1
            pltpu.VMEM((n_shift * inner_pad, N * lq), jnp.float32),   # up taps
        ],
        compiler_params=pltpu.CompilerParams(
            dimension_semantics=("arbitrary",),
            vmem_limit_bytes=32 * 1024 * 1024,       # v7x-safe budget
        ),
    )(x_ps, w1, w2s, gamma2, beta2, mask)

    # Phase merge: (N*c_tot, s*lq) -> (N, c_tot, lq, s) -> (N, c_tot, lq*s) -> trim
    out = (out2.reshape(N, c_tot, s, lq).transpose(0, 1, 3, 2)
           .reshape(N, c_tot, s * lq)[:, :, :L])
    return out


# ---------------------------------------------------------------------------
# Pure-JAX reference (lax convs) with matching bf16 cast points
# ---------------------------------------------------------------------------

def _reference(x, w_down, w_up, gamma, beta, *, k_size, stride, padding,
               transpose, dot_dtype=jnp.bfloat16):
    lr = jnp.where(x >= 0, x, 0.2 * x)
    y = lax.conv_general_dilated(
        lr.astype(dot_dtype), w_down.astype(dot_dtype), (stride,),
        [(padding, padding)], dimension_numbers=('NCH', 'OIH', 'NCH'),
        preferred_element_type=jnp.float32)
    y = jnp.maximum(y, 0.0)
    kt = k_size + 1
    w_oih = jnp.flip(w_up, axis=2).transpose(1, 0, 2)
    f = lax.conv_general_dilated(
        y.astype(dot_dtype), w_oih.astype(dot_dtype), (1,),
        [(kt - 1 - transpose, kt - 1 - transpose)], lhs_dilation=(stride,),
        dimension_numbers=('NCH', 'OIH', 'NCH'),
        preferred_element_type=jnp.float32)
    mean = f.mean(axis=(0, 2), keepdims=True)
    var = ((f - mean) ** 2).mean(axis=(0, 2), keepdims=True)
    f = (f - mean) * lax.rsqrt(var + 1e-5)
    f = f * gamma.reshape(1, -1, 1) + beta.reshape(1, -1, 1)
    return jnp.concatenate([x, f], axis=1)


if __name__ == "__main__":
    # Hyper-params chosen so the up path restores the input length (required
    # for the channel concat): k_size=5, stride=2, padding=transpose=2.
    N, outer_nc, inner_nc, L = 2, 4, 8, 16
    k_size, stride, padding = 5, 2, 2
    transpose = padding                 # constructor default: transpose = padding
    input_nc = outer_nc                 # constructor default: input_nc = outer_nc

    key = jax.random.PRNGKey(0)
    kx, kd, ku = jax.random.split(key, 3)
    x = jax.random.normal(kx, (N, input_nc, L), jnp.float32)
    # Conv1d weight: (inner, input_nc, k); ConvTranspose1d weight: (inner, outer, k+1)
    w_down = 0.1 * jax.random.normal(kd, (inner_nc, input_nc, k_size), jnp.float32)
    w_up = 0.1 * jax.random.normal(ku, (inner_nc, outer_nc, k_size + 1), jnp.float32)
    # BatchNorm1d default affine init (deterministic): gamma=1, beta=0.
    gamma = jnp.ones((outer_nc,), jnp.float32)
    beta = jnp.zeros((outer_nc,), jnp.float32)

    out = unet_block_innermost(x, w_down, w_up, gamma, beta,
                               k_size=k_size, stride=stride,
                               padding=padding, transpose=transpose)
    out = jax.block_until_ready(out)
    assert out.shape == (N, input_nc + outer_nc, L), out.shape

    ref = _reference(x, w_down, w_up, gamma, beta,
                     k_size=k_size, stride=stride, padding=padding,
                     transpose=transpose, dot_dtype=jnp.bfloat16)
    err = float(jnp.max(jnp.abs(out - ref)))
    assert jnp.allclose(out, ref, atol=2e-3, rtol=2e-3), err

    print("KERNEL_OK")
</pallas_src>

<mosaic_0001>
module attributes {stable_mosaic.version = 11 : i64} {
  func.func @kernel(%arg0: i32, %arg1: memref<2x2x8x10xf32, #tpu.memory_space<vmem>>, %arg2: memref<8x40xbf16, #tpu.memory_space<vmem>>, %arg3: memref<8x24xbf16, #tpu.memory_space<vmem>>, %arg4: memref<4x1xf32, #tpu.memory_space<vmem>>, %arg5: memref<4x1xf32, #tpu.memory_space<vmem>>, %arg6: memref<8x16xf32, #tpu.memory_space<vmem>>, %arg7: memref<16x16xf32, #tpu.memory_space<vmem>>, %arg8: memref<2x2x8x10xf32, #tpu.memory_space<vmem>>, %arg9: memref<40x16xf32, #tpu.memory_space<vmem>>, %arg10: memref<8x20xf32, #tpu.memory_space<vmem>>, %arg11: memref<24x16xf32, #tpu.memory_space<vmem>>) attributes {dimension_semantics = [#tpu.dimension_semantics<arbitrary>], iteration_bounds = array<i64: 1>, scalar_prefetch = 0 : i64, scratch_operands = 4 : i64, tpu.core_type = #tpu.core_type<tc>, window_params = [{pipeline_mode = #tpu.pipeline_mode<synchronous>, transform_indices = @transform_0, window_bounds = array<i64: 2, 2, 8, 10>}, {pipeline_mode = #tpu.pipeline_mode<synchronous>, transform_indices = @transform_1, window_bounds = array<i64: 8, 40>}, {pipeline_mode = #tpu.pipeline_mode<synchronous>, transform_indices = @transform_2, window_bounds = array<i64: 8, 24>}, {pipeline_mode = #tpu.pipeline_mode<synchronous>, transform_indices = @transform_3, window_bounds = array<i64: 4, 1>}, {pipeline_mode = #tpu.pipeline_mode<synchronous>, transform_indices = @transform_4, window_bounds = array<i64: 4, 1>}, {pipeline_mode = #tpu.pipeline_mode<synchronous>, transform_indices = @transform_5, window_bounds = array<i64: 8, 16>}, {pipeline_mode = #tpu.pipeline_mode<synchronous>, transform_indices = @transform_6, window_bounds = array<i64: 16, 16>}]} {
    %c0 = arith.constant 0 : index
    %c0_0 = arith.constant 0 : index
    %c0_1 = arith.constant 0 : index
    %c0_2 = arith.constant 0 : index
    %0 = vector.load %arg1[%c0, %c0_0, %c0_1, %c0_2] : memref<2x2x8x10xf32, #tpu.memory_space<vmem>>, vector<2x2x8x10xf32>
    %cst = arith.constant 0.000000e+00 : f32
    %1 = vector.broadcast %cst : f32 to vector<2x2x8x10xf32>
    %2 = arith.cmpf oge, %0, %1 : vector<2x2x8x10xf32>
    %cst_3 = arith.constant 2.000000e-01 : f32
    %3 = vector.broadcast %cst_3 : f32 to vector<2x2x8x10xf32>
    %4 = arith.mulf %3, %0 : vector<2x2x8x10xf32>
    %5 = arith.select %2, %0, %4 : vector<2x2x8x10xi1>, vector<2x2x8x10xf32>
    %c0_4 = arith.constant 0 : index
    %c0_5 = arith.constant 0 : index
    %c0_6 = arith.constant 0 : index
    %c0_7 = arith.constant 0 : index
    %6 = vector.load %arg8[%c0_4, %c0_5, %c0_6, %c0_7] : memref<2x2x8x10xf32, #tpu.memory_space<vmem>>, vector<2x2x8x10xf32>
    tpu.vector_store %arg8[%c0_4, %c0_5, %c0_6, %c0_7], %5 {strides = array<i32>} : memref<2x2x8x10xf32, #tpu.memory_space<vmem>>, vector<2x2x8x10xf32>,
    %c0_8 = arith.constant 0 : index
    %c0_9 = arith.constant 0 : index
    %c0_10 = arith.constant 0 : index
    %c0_11 = arith.constant 0 : index
    %7 = vector.load %arg8[%c0_8, %c0_9, %c0_10, %c0_11] : memref<2x2x8x10xf32, #tpu.memory_space<vmem>>, vector<1x1x8x8xf32>
    %8 = vector.shape_cast %7 : vector<1x1x8x8xf32> to vector<8x8xf32>
    %c0_12 = arith.constant 0 : index
    %c0_13 = arith.constant 0 : index
    %9 = vector.load %arg9[%c0_12, %c0_13] : memref<40x16xf32, #tpu.memory_space<vmem>>, vector<8x8xf32>
    tpu.vector_store %arg9[%c0_12, %c0_13], %8 {strides = array<i32>} : memref<40x16xf32, #tpu.memory_space<vmem>>, vector<8x8xf32>,
    %c1 = arith.constant 1 : index
    %c0_14 = arith.constant 0 : index
    %c0_15 = arith.constant 0 : index
    %c0_16 = arith.constant 0 : index
    %10 = vector.load %arg8[%c1, %c0_14, %c0_15, %c0_16] : memref<2x2x8x10xf32, #tpu.memory_space<vmem>>, vector<1x1x8x8xf32>
    %11 = vector.shape_cast %10 : vector<1x1x8x8xf32> to vector<8x8xf32>
    %c0_17 = arith.constant 0 : index
    %c8 = arith.constant 8 : index
    %12 = vector.load %arg9[%c0_17, %c8] : memref<40x16xf32, #tpu.memory_space<vmem>>, vector<8x8xf32>
    tpu.vector_store %arg9[%c0_17, %c8], %11 {strides = array<i32>} : memref<40x16xf32, #tpu.memory_space<vmem>>, vector<8x8xf32>,
    %c0_18 = arith.constant 0 : index
    %c1_19 = arith.constant 1 : index
    %c0_20 = arith.constant 0 : index
    %c0_21 = arith.constant 0 : index
    %13 = vector.load %arg8[%c0_18, %c1_19, %c0_20, %c0_21] : memref<2x2x8x10xf32, #tpu.memory_space<vmem>>, vector<1x1x8x8xf32>
    %14 = vector.shape_cast %13 : vector<1x1x8x8xf32> to vector<8x8xf32>
    %c8_22 = arith.constant 8 : index
    %c0_23 = arith.constant 0 : index
    %15 = vector.load %arg9[%c8_22, %c0_23] : memref<40x16xf32, #tpu.memory_space<vmem>>, vector<8x8xf32>
    tpu.vector_store %arg9[%c8_22, %c0_23], %14 {strides = array<i32>} : memref<40x16xf32, #tpu.memory_space<vmem>>, vector<8x8xf32>,
    %c1_24 = arith.constant 1 : index
    %c1_25 = arith.constant 1 : index
    %c0_26 = arith.constant 0 : index
    %c0_27 = arith.constant 0 : index
    %16 = vector.load %arg8[%c1_24, %c1_25, %c0_26, %c0_27] : memref<2x2x8x10xf32, #tpu.memory_space<vmem>>, vector<1x1x8x8xf32>
    %17 = vector.shape_cast %16 : vector<1x1x8x8xf32> to vector<8x8xf32>
    %c8_28 = arith.constant 8 : index
    %c8_29 = arith.constant 8 : index
    %18 = vector.load %arg9[%c8_28, %c8_29] : memref<40x16xf32, #tpu.memory_space<vmem>>, vector<8x8xf32>
    tpu.vector_store %arg9[%c8_28, %c8_29], %17 {strides = array<i32>} : memref<40x16xf32, #tpu.memory_space<vmem>>, vector<8x8xf32>,
    %c0_30 = arith.constant 0 : index
    %c0_31 = arith.constant 0 : index
    %c0_32 = arith.constant 0 : index
    %c1_33 = arith.constant 1 : index
    %19 = vector.load %arg8[%c0_30, %c0_31, %c0_32, %c1_33] : memref<2x2x8x10xf32, #tpu.memory_space<vmem>>, vector<1x1x8x8xf32>
    %20 = vector.shape_cast %19 : vector<1x1x8x8xf32> to vector<8x8xf32>
    %c16 = arith.constant 16 : index
    %c0_34 = arith.constant 0 : index
    %21 = vector.load %arg9[%c16, %c0_34] : memref<40x16xf32, #tpu.memory_space<vmem>>, vector<8x8xf32>
    tpu.vector_store %arg9[%c16, %c0_34], %20 {strides = array<i32>} : memref<40x16xf32, #tpu.memory_space<vmem>>, vector<8x8xf32>,
    %c1_35 = arith.constant 1 : index
    %c0_36 = arith.constant 0 : index
    %c0_37 = arith.constant 0 : index
    %c1_38 = arith.constant 1 : index
    %22 = vector.load %arg8[%c1_35, %c0_36, %c0_37, %c1_38] : memref<2x2x8x10xf32, #tpu.memory_space<vmem>>, vector<1x1x8x8xf32>
    %23 = vector.shape_cast %22 : vector<1x1x8x8xf32> to vector<8x8xf32>
    %c16_39 = arith.constant 16 : index
    %c8_40 = arith.constant 8 : index
    %24 = vector.load %arg9[%c16_39, %c8_40] : memref<40x16xf32, #tpu.memory_space<vmem>>, vector<8x8xf32>
    tpu.vector_store %arg9[%c16_39, %c8_40], %23 {strides = array<i32>} : memref<40x16xf32, #tpu.memory_space<vmem>>, vector<8x8xf32>,
    %c0_41 = arith.constant 0 : index
    %c1_42 = arith.constant 1 : index
    %c0_43 = arith.constant 0 : index
    %c1_44 = arith.constant 1 : index
    %25 = vector.load %arg8[%c0_41, %c1_42, %c0_43, %c1_44] : memref<2x2x8x10xf32, #tpu.memory_space<vmem>>, vector<1x1x8x8xf32>
    %26 = vector.shape_cast %25 : vector<1x1x8x8xf32> to vector<8x8xf32>
    %c24 = arith.constant 24 : index
    %c0_45 = arith.constant 0 : index
    %27 = vector.load %arg9[%c24, %c0_45] : memref<40x16xf32, #tpu.memory_space<vmem>>, vector<8x8xf32>
    tpu.vector_store %arg9[%c24, %c0_45], %26 {strides = array<i32>} : memref<40x16xf32, #tpu.memory_space<vmem>>, vector<8x8xf32>,
    %c1_46 = arith.constant 1 : index
    %c1_47 = arith.constant 1 : index
    %c0_48 = arith.constant 0 : index
    %c1_49 = arith.constant 1 : index
    %28 = vector.load %arg8[%c1_46, %c1_47, %c0_48, %c1_49] : memref<2x2x8x10xf32, #tpu.memory_space<vmem>>, vector<1x1x8x8xf32>
    %29 = vector.shape_cast %28 : vector<1x1x8x8xf32> to vector<8x8xf32>
    %c24_50 = arith.constant 24 : index
    %c8_51 = arith.constant 8 : index
    %30 = vector.load %arg9[%c24_50, %c8_51] : memref<40x16xf32, #tpu.memory_space<vmem>>, vector<8x8xf32>
    tpu.vector_store %arg9[%c24_50, %c8_51], %29 {strides = array<i32>} : memref<40x16xf32, #tpu.memory_space<vmem>>, vector<8x8xf32>,
    %c0_52 = arith.constant 0 : index
    %c0_53 = arith.constant 0 : index
    %c0_54 = arith.constant 0 : index
    %c2 = arith.constant 2 : index
    %31 = vector.load %arg8[%c0_52, %c0_53, %c0_54, %c2] : memref<2x2x8x10xf32, #tpu.memory_space<vmem>>, vector<1x1x8x8xf32>
    %32 = vector.shape_cast %31 : vector<1x1x8x8xf32> to vector<8x8xf32>
    %c32 = arith.constant 32 : index
    %c0_55 = arith.constant 0 : index
    %33 = vector.load %arg9[%c32, %c0_55] : memref<40x16xf32, #tpu.memory_space<vmem>>, vector<8x8xf32>
    tpu.vector_store %arg9[%c32, %c0_55], %32 {strides = array<i32>} : memref<40x16xf32, #tpu.memory_space<vmem>>, vector<8x8xf32>,
    %c1_56 = arith.constant 1 : index
    %c0_57 = arith.constant 0 : index
    %c0_58 = arith.constant 0 : index
    %c2_59 = arith.constant 2 : index
    %34 = vector.load %arg8[%c1_56, %c0_57, %c0_58, %c2_59] : memref<2x2x8x10xf32, #tpu.memory_space<vmem>>, vector<1x1x8x8xf32>
    %35 = vector.shape_cast %34 : vector<1x1x8x8xf32> to vector<8x8xf32>
    %c32_60 = arith.constant 32 : index
    %c8_61 = arith.constant 8 : index
    %36 = vector.load %arg9[%c32_60, %c8_61] : memref<40x16xf32, #tpu.memory_space<vmem>>, vector<8x8xf32>
    tpu.vector_store %arg9[%c32_60, %c8_61], %35 {strides = array<i32>} : memref<40x16xf32, #tpu.memory_space<vmem>>, vector<8x8xf32>,
    %c0_62 = arith.constant 0 : index
    %c0_63 = arith.constant 0 : index
    %37 = vector.load %arg2[%c0_62, %c0_63] : memref<8x40xbf16, #tpu.memory_space<vmem>>, vector<8x40xbf16>
    %c0_64 = arith.constant 0 : index
    %c0_65 = arith.constant 0 : index
    %38 = vector.load %arg9[%c0_64, %c0_65] : memref<40x16xf32, #tpu.memory_space<vmem>>, vector<40x16xf32>
    %39 = arith.truncf %38 : vector<40x16xf32> to vector<40x16xbf16>
    %cst_66 = arith.constant dense<0.000000e+00> : vector<8x16xf32>
    %40 = tpu.matmul %37, %39, %cst_66 {dimension_numbers = #tpu.dot_dimension_numbers<[1], [0], [0], [1], [0, 0, 1, 1], [], []>} : vector<8x40xbf16>, vector<40x16xbf16>, vector<8x16xf32> -> vector<8x16xf32>
    %cst_67 = arith.constant 0.000000e+00 : f32
    %41 = vector.broadcast %cst_67 : f32 to vector<8x16xf32>
    %42 = arith.maximumf %40, %41 : vector<8x16xf32>
    %cst_68 = arith.constant 0.000000e+00 : f32
    %43 = vector.broadcast %cst_68 : f32 to vector<8x20xf32>
    %c0_69 = arith.constant 0 : index
    %c0_70 = arith.constant 0 : index
    %44 = vector.load %arg10[%c0_69, %c0_70] : memref<8x20xf32, #tpu.memory_space<vmem>>, vector<8x20xf32>
    tpu.vector_store %arg10[%c0_69, %c0_70], %43 {strides = array<i32>} : memref<8x20xf32, #tpu.memory_space<vmem>>, vector<8x20xf32>,
    %45 = vector.extract_strided_slice %42 {offsets = [0, 0], sizes = [8, 8], strides = [1, 1]} : vector<8x16xf32> to vector<8x8xf32>
    %c0_71 = arith.constant 0 : index
    %c1_72 = arith.constant 1 : index
    %46 = vector.load %arg10[%c0_71, %c1_72] : memref<8x20xf32, #tpu.memory_space<vmem>>, vector<8x8xf32>
    tpu.vector_store %arg10[%c0_71, %c1_72], %45 {strides = array<i32>} : memref<8x20xf32, #tpu.memory_space<vmem>>, vector<8x8xf32>,
    %47 = vector.extract_strided_slice %42 {offsets = [0, 8], sizes = [8, 8], strides = [1, 1]} : vector<8x16xf32> to vector<8x8xf32>
    %c0_73 = arith.constant 0 : index
    %c11 = arith.constant 11 : index
    %48 = vector.load %arg10[%c0_73, %c11] : memref<8x20xf32, #tpu.memory_space<vmem>>, vector<8x8xf32>
    tpu.vector_store %arg10[%c0_73, %c11], %47 {strides = array<i32>} : memref<8x20xf32, #tpu.memory_space<vmem>>, vector<8x8xf32>,
    %c0_74 = arith.constant 0 : index
    %c0_75 = arith.constant 0 : index
    %49 = vector.load %arg10[%c0_74, %c0_75] : memref<8x20xf32, #tpu.memory_space<vmem>>, vector<8x8xf32>
    %c0_76 = arith.constant 0 : index
    %c0_77 = arith.constant 0 : index
    %50 = vector.load %arg11[%c0_76, %c0_77] : memref<24x16xf32, #tpu.memory_space<vmem>>, vector<8x8xf32>
    tpu.vector_store %arg11[%c0_76, %c0_77], %49 {strides = array<i32>} : memref<24x16xf32, #tpu.memory_space<vmem>>, vector<8x8xf32>,
    %c0_78 = arith.constant 0 : index
    %c10 = arith.constant 10 : index
    %51 = vector.load %arg10[%c0_78, %c10] : memref<8x20xf32, #tpu.memory_space<vmem>>, vector<8x8xf32>
    %c0_79 = arith.constant 0 : index
    %c8_80 = arith.constant 8 : index
    %52 = vector.load %arg11[%c0_79, %c8_80] : memref<24x16xf32, #tpu.memory_space<vmem>>, vector<8x8xf32>
    tpu.vector_store %arg11[%c0_79, %c8_80], %51 {strides = array<i32>} : memref<24x16xf32, #tpu.memory_space<vmem>>, vector<8x8xf32>,
    %c0_81 = arith.constant 0 : index
    %c1_82 = arith.constant 1 : index
    %53 = vector.load %arg10[%c0_81, %c1_82] : memref<8x20xf32, #tpu.memory_space<vmem>>, vector<8x8xf32>
    %c8_83 = arith.constant 8 : index
    %c0_84 = arith.constant 0 : index
    %54 = vector.load %arg11[%c8_83, %c0_84] : memref<24x16xf32, #tpu.memory_space<vmem>>, vector<8x8xf32>
    tpu.vector_store %arg11[%c8_83, %c0_84], %53 {strides = array<i32>} : memref<24x16xf32, #tpu.memory_space<vmem>>, vector<8x8xf32>,
    %c0_85 = arith.constant 0 : index
    %c11_86 = arith.constant 11 : index
    %55 = vector.load %arg10[%c0_85, %c11_86] : memref<8x20xf32, #tpu.memory_space<vmem>>, vector<8x8xf32>
    %c8_87 = arith.constant 8 : index
    %c8_88 = arith.constant 8 : index
    %56 = vector.load %arg11[%c8_87, %c8_88] : memref<24x16xf32, #tpu.memory_space<vmem>>, vector<8x8xf32>
    tpu.vector_store %arg11[%c8_87, %c8_88], %55 {strides = array<i32>} : memref<24x16xf32, #tpu.memory_space<vmem>>, vector<8x8xf32>,
    %c0_89 = arith.constant 0 : index
    %c2_90 = arith.constant 2 : index
    %57 = vector.load %arg10[%c0_89, %c2_90] : memref<8x20xf32, #tpu.memory_space<vmem>>, vector<8x8xf32>
    %c16_91 = arith.constant 16 : index
    %c0_92 = arith.constant 0 : index
    %58 = vector.load %arg11[%c16_91, %c0_92] : memref<24x16xf32, #tpu.memory_space<vmem>>, vector<8x8xf32>
    tpu.vector_store %arg11[%c16_91, %c0_92], %57 {strides = array<i32>} : memref<24x16xf32, #tpu.memory_space<vmem>>, vector<8x8xf32>,
    %c0_93 = arith.constant 0 : index
    %c12 = arith.constant 12 : index
    %59 = vector.load %arg10[%c0_93, %c12] : memref<8x20xf32, #tpu.memory_space<vmem>>, vector<8x8xf32>
    %c16_94 = arith.constant 16 : index
    %c8_95 = arith.constant 8 : index
    %60 = vector.load %arg11[%c16_94, %c8_95] : memref<24x16xf32, #tpu.memory_space<vmem>>, vector<8x8xf32>
    tpu.vector_store %arg11[%c16_94, %c8_95], %59 {strides = array<i32>} : memref<24x16xf32, #tpu.memory_space<vmem>>, vector<8x8xf32>,
    %c0_96 = arith.constant 0 : index
    %c0_97 = arith.constant 0 : index
    %61 = vector.load %arg3[%c0_96, %c0_97] : memref<8x24xbf16, #tpu.memory_space<vmem>>, vector<8x24xbf16>
    %c0_98 = arith.constant 0 : index
    %c0_99 = arith.constant 0 : index
    %62 = vector.load %arg11[%c0_98, %c0_99] : memref<24x16xf32, #tpu.memory_space<vmem>>, vector<24x16xf32>
    %63 = arith.truncf %62 : vector<24x16xf32> to vector<24x16xbf16>
    %cst_100 = arith.constant dense<0.000000e+00> : vector<8x16xf32>
    %64 = tpu.matmul %61, %63, %cst_100 {dimension_numbers = #tpu.dot_dimension_numbers<[1], [0], [0], [1], [0, 0, 1, 1], [], []>} : vector<8x24xbf16>, vector<24x16xbf16>, vector<8x16xf32> -> vector<8x16xf32>
    %c0_101 = arith.constant 0 : index
    %c0_102 = arith.constant 0 : index
    %65 = vector.load %arg6[%c0_101, %c0_102] : memref<8x16xf32, #tpu.memory_space<vmem>>, vector<8x16xf32>
    %66 = arith.mulf %64, %65 : vector<8x16xf32>
    %cst_103 = arith.constant dense<0.000000e+00> : vector<8xf32>
    %67 = vector.multi_reduction <add>, %66, %cst_103 [1] : vector<8x16xf32> to vector<8xf32>
    %68 = vector.shape_cast %67 : vector<8xf32> to vector<8x1xf32>
    %69 = vector.extract_strided_slice %68 {offsets = [0, 0], sizes = [4, 1], strides = [1, 1]} : vector<8x1xf32> to vector<4x1xf32>
    %70 = vector.extract_strided_slice %68 {offsets = [4, 0], sizes = [4, 1], strides = [1, 1]} : vector<8x1xf32> to vector<4x1xf32>
    %71 = arith.addf %69, %70 : vector<4x1xf32>
    %cst_104 = arith.constant 3.125000e-02 : f32
    %72 = vector.broadcast %cst_104 : f32 to vector<4x1xf32>
    %73 = arith.mulf %71, %72 : vector<4x1xf32>
    %74 = tpu.concatenate %73, %73 in 0 : vector<4x1xf32>, vector<4x1xf32> -> vector<8x1xf32>
    %75 = vector.broadcast %74 : vector<8x1xf32> to vector<8x16xf32>
    %76 = arith.subf %64, %75 : vector<8x16xf32>
    %77 = arith.mulf %76, %65 : vector<8x16xf32>
    %78 = arith.mulf %77, %77 : vector<8x16xf32>
    %cst_105 = arith.constant dense<0.000000e+00> : vector<8xf32>
    %79 = vector.multi_reduction <add>, %78, %cst_105 [1] : vector<8x16xf32> to vector<8xf32>
    %80 = vector.shape_cast %79 : vector<8xf32> to vector<8x1xf32>
    %81 = vector.extract_strided_slice %80 {offsets = [0, 0], sizes = [4, 1], strides = [1, 1]} : vector<8x1xf32> to vector<4x1xf32>
    %82 = vector.extract_strided_slice %80 {offsets = [4, 0], sizes = [4, 1], strides = [1, 1]} : vector<8x1xf32> to vector<4x1xf32>
    %83 = arith.addf %81, %82 : vector<4x1xf32>
    %cst_106 = arith.constant 3.125000e-02 : f32
    %84 = vector.broadcast %cst_106 : f32 to vector<4x1xf32>
    %85 = arith.mulf %83, %84 : vector<4x1xf32>
    %cst_107 = arith.constant 9.99999974E-6 : f32
    %86 = vector.broadcast %cst_107 : f32 to vector<4x1xf32>
    %87 = arith.addf %85, %86 : vector<4x1xf32>
    %88 = math.rsqrt %87 : vector<4x1xf32>
    %c0_108 = arith.constant 0 : index
    %c0_109 = arith.constant 0 : index
    %89 = vector.load %arg4[%c0_108, %c0_109] : memref<4x1xf32, #tpu.memory_space<vmem>>, vector<4x1xf32>
    %90 = arith.mulf %89, %88 : vector<4x1xf32>
    %c0_110 = arith.constant 0 : index
    %c0_111 = arith.constant 0 : index
    %91 = vector.load %arg5[%c0_110, %c0_111] : memref<4x1xf32, #tpu.memory_space<vmem>>, vector<4x1xf32>
    %92 = arith.mulf %73, %90 : vector<4x1xf32>
    %93 = arith.subf %91, %92 : vector<4x1xf32>
    %94 = tpu.concatenate %90, %90 in 0 : vector<4x1xf32>, vector<4x1xf32> -> vector<8x1xf32>
    %95 = vector.broadcast %94 : vector<8x1xf32> to vector<8x16xf32>
    %96 = arith.mulf %64, %95 : vector<8x16xf32>
    %97 = tpu.concatenate %93, %93 in 0 : vector<4x1xf32>, vector<4x1xf32> -> vector<8x1xf32>
    %98 = vector.broadcast %97 : vector<8x1xf32> to vector<8x16xf32>
    %99 = arith.addf %96, %98 : vector<8x16xf32>
    %c0_112 = arith.constant 0 : index
    %c0_113 = arith.constant 0 : index
    %c0_114 = arith.constant 0 : index
    %c1_115 = arith.constant 1 : index
    %100 = vector.load %arg1[%c0_112, %c0_113, %c0_114, %c1_115] : memref<2x2x8x10xf32, #tpu.memory_space<vmem>>, vector<1x1x4x8xf32>
    %101 = vector.shape_cast %100 : vector<1x1x4x8xf32> to vector<4x8xf32>
    %c0_116 = arith.constant 0 : index
    %c1_117 = arith.constant 1 : index
    %c0_118 = arith.constant 0 : index
    %c1_119 = arith.constant 1 : index
    %102 = vector.load %arg1[%c0_116, %c1_117, %c0_118, %c1_119] : memref<2x2x8x10xf32, #tpu.memory_space<vmem>>, vector<1x1x4x8xf32>
    %103 = vector.shape_cast %102 : vector<1x1x4x8xf32> to vector<4x8xf32>
    %104 = tpu.concatenate %101, %103 in 1 : vector<4x8xf32>, vector<4x8xf32> -> vector<4x16xf32>
    %105 = vector.extract_strided_slice %99 {offsets = [0, 0], sizes = [4, 8], strides = [1, 1]} : vector<8x16xf32> to vector<4x8xf32>
    %106 = vector.extract_strided_slice %99 {offsets = [4, 0], sizes = [4, 8], strides = [1, 1]} : vector<8x16xf32> to vector<4x8xf32>
    %107 = tpu.concatenate %105, %106 in 1 : vector<4x8xf32>, vector<4x8xf32> -> vector<4x16xf32>
    %108 = tpu.concatenate %104, %107 in 0 : vector<4x16xf32>, vector<4x16xf32> -> vector<8x16xf32>
    %c1_120 = arith.constant 1 : index
    %c0_121 = arith.constant 0 : index
    %c0_122 = arith.constant 0 : index
    %c1_123 = arith.constant 1 : index
    %109 = vector.load %arg1[%c1_120, %c0_121, %c0_122, %c1_123] : memref<2x2x8x10xf32, #tpu.memory_space<vmem>>, vector<1x1x4x8xf32>
    %110 = vector.shape_cast %109 : vector<1x1x4x8xf32> to vector<4x8xf32>
    %c1_124 = arith.constant 1 : index
    %c1_125 = arith.constant 1 : index
    %c0_126 = arith.constant 0 : index
    %c1_127 = arith.constant 1 : index
    %111 = vector.load %arg1[%c1_124, %c1_125, %c0_126, %c1_127] : memref<2x2x8x10xf32, #tpu.memory_space<vmem>>, vector<1x1x4x8xf32>
    %112 = vector.shape_cast %111 : vector<1x1x4x8xf32> to vector<4x8xf32>
    %113 = tpu.concatenate %110, %112 in 1 : vector<4x8xf32>, vector<4x8xf32> -> vector<4x16xf32>
    %114 = vector.extract_strided_slice %99 {offsets = [0, 8], sizes = [4, 8], strides = [1, 1]} : vector<8x16xf32> to vector<4x8xf32>
    %115 = vector.extract_strided_slice %99 {offsets = [4, 8], sizes = [4, 8], strides = [1, 1]} : vector<8x16xf32> to vector<4x8xf32>
    %116 = tpu.concatenate %114, %115 in 1 : vector<4x8xf32>, vector<4x8xf32> -> vector<4x16xf32>
    %117 = tpu.concatenate %113, %116 in 0 : vector<4x16xf32>, vector<4x16xf32> -> vector<8x16xf32>
    %118 = tpu.concatenate %108, %117 in 0 : vector<8x16xf32>, vector<8x16xf32> -> vector<16x16xf32>
    %c0_128 = arith.constant 0 : index
    %c0_129 = arith.constant 0 : index
    %119 = vector.load %arg7[%c0_128, %c0_129] : memref<16x16xf32, #tpu.memory_space<vmem>>, vector<16x16xf32>
    tpu.vector_store %arg7[%c0_128, %c0_129], %118 {strides = array<i32>} : memref<16x16xf32, #tpu.memory_space<vmem>>, vector<16x16xf32>,
    return
  }
  func.func @transform_0(%arg0: i32) -> (i32, i32, i32, i32) {
    %c0_i32 = arith.constant 0 : i32
    %c0_i32_0 = arith.constant 0 : i32
    %c0_i32_1 = arith.constant 0 : i32
    %c0_i32_2 = arith.constant 0 : i32
    %c0_i32_3 = arith.constant 0 : i32
    return %c0_i32, %c0_i32_0, %c0_i32_1, %c0_i32_2 : i32, i32, i32, i32
  }
  func.func @transform_1(%arg0: i32) -> (i32, i32) {
    %c0_i32 = arith.constant 0 : i32
    %c0_i32_0 = arith.constant 0 : i32
    %c0_i32_1 = arith.constant 0 : i32
    return %c0_i32, %c0_i32_0 : i32, i32
  }
  func.func @transform_2(%arg0: i32) -> (i32, i32) {
    %c0_i32 = arith.constant 0 : i32
    %c0_i32_0 = arith.constant 0 : i32
    %c0_i32_1 = arith.constant 0 : i32
    return %c0_i32, %c0_i32_0 : i32, i32
  }
  func.func @transform_3(%arg0: i32) -> (i32, i32) {
    %c0_i32 = arith.constant 0 : i32
    %c0_i32_0 = arith.constant 0 : i32
    %c0_i32_1 = arith.constant 0 : i32
    return %c0_i32, %c0_i32_0 : i32, i32
  }
  func.func @transform_4(%arg0: i32) -> (i32, i32) {
    %c0_i32 = arith.constant 0 : i32
    %c0_i32_0 = arith.constant 0 : i32
    %c0_i32_1 = arith.constant 0 : i32
    return %c0_i32, %c0_i32_0 : i32, i32
  }
  func.func @transform_5(%arg0: i32) -> (i32, i32) {
    %c0_i32 = arith.constant 0 : i32
    %c0_i32_0 = arith.constant 0 : i32
    %c0_i32_1 = arith.constant 0 : i32
    return %c0_i32, %c0_i32_0 : i32, i32
  }
  func.func @transform_6(%arg0: i32) -> (i32, i32) {
    %c0_i32 = arith.constant 0 : i32
    %c0_i32_0 = arith.constant 0 : i32
    %c0_i32_1 = arith.constant 0 : i32
    return %c0_i32, %c0_i32_0 : i32, i32
  }
}

</mosaic_0001>

<bundles_post_ra>
// kernel: unet_block_innermost.1
= control target key start
LH: loop header
LB: loop body
LE: loop exit
PB: predicated region body
PF: predicated region fallthrough
CT: control target
= control target key end

     0   :  { %vm40_vm0 = vcmask 80896   ;;  %vm46_vm5 = vcmask 64512   ;;  %s413_s29 = smov 126   ;;  %s414_s30 = smov 127   ;;  %v415_v15 = vmov 0.0   ;;  %vm418_vm6 = vmmov 0   ;;  %s564_s0 = inlined_call_operand.vmem [shape: f32[2,2,8,10], index: 0, kind: input, shape index: {}]   ;;  %s565_s1 = inlined_call_operand.vmem [shape: bf16[8,40], index: 1, kind: input, shape index: {}]   ;;  %s566_s2 = inlined_call_operand.vmem [shape: bf16[8,24], index: 2, kind: input, shape index: {}]   ;;  %s567_s5 = inlined_call_operand.vmem [shape: f32[8,16], index: 5, kind: input, shape index: {}]   ;;  %s568_s3 = inlined_call_operand.vmem [shape: f32[4,1], index: 3, kind: input, shape index: {}]   ;;  %s569_s4 = inlined_call_operand.vmem [shape: f32[4,1], index: 4, kind: input, shape index: {}]   ;;  %s570_s6 = inlined_call_operand.vmem [shape: f32[16,16], index: 6, kind: output, shape index: {}]  }
   0x1   :  { %v24_v0 = vld [vmem:[%s564_s0] sm:$0xff]  ;;  %v26_v1 = vld [vmem:[%s564_s0 + $0x10] sm:$0xff]  ;;  %v25_v2 = vld [vmem:[%s564_s0 + $0x8] sm:$0xff]  ;;  %378 = vmatprep.subr.bf16.mxu0 %v415_v15  ;;  %388 = vmatprep.subr.bf16.mxu1 %v415_v15  ;;  %s416_s7 = smov 6   ;;  %s417_s8 = smov 7   ;;  %vm54_vm7 = vcmask 130112  }
   0x2   :  { %vm28_vm1 = vcmp.ge.f32.partialorder %v24_v0, 0.0  ;;  %v32_v3 = vmul.f32 0.2, %v24_v0  ;;  %vm30_vm2 = vcmp.ge.f32.partialorder %v26_v1, 0.0  ;;  %v34_v4 = vmul.f32 0.2, %v26_v1  ;;  %384 = vmatprep.mubr.msk.bf16.mxu0 %vm418_vm6, %v415_v15  ;;  %392 = vmatprep.mubr.msk.bf16.mxu1 %vm418_vm6, %v415_v15 }
   0x3   :  { %vm29_vm3 = vcmp.ge.f32.partialorder %v25_v2, 0.0  ;;  %v33_v5 = vmul.f32 0.2, %v25_v2  ;;  %v27_v6 = vld [vmem:[%s564_s0 + $0x18] sm:$0xff]  ;;  %s419_s9 = smov 8   ;;  %vm115_vm8 = vcmask 1043456  }
   0x4   :  { %v36_v7 = vsel %vm28_vm1, %v24_v0, %v32_v3  ;;  %v38_v8 = vsel %vm30_vm2, %v26_v1, %v34_v4  ;;  %vm31_vm4 = vcmp.ge.f32.partialorder %v27_v6, 0.0  ;;  %v35_v9 = vmul.f32 0.2, %v27_v6  ;;  %v102_v34 = vld [vmem:[%s565_s1] sm:$0xf]  ;;  %s420_s12 = smov 3  }
   0x5   :  { %41 = vst.msk [vmem:[#allocation2] sm:$0xff] %vm40_vm0, %v36_v7  ;;  %43 = vst.msk [vmem:[#allocation2 + $0x10] sm:$0xff] %vm40_vm0, %v38_v8  ;;  %v37_v10 = vsel %vm29_vm3, %v25_v2, %v33_v5  ;;  %vm111_vm9 = vcmask 326656   ;;  %vm160_vm10 = vcmask 162816   ;;  %s421_s13 = smov 1   ;;  %vm166_vm11 = vcmask 72712  }
   0x6   :  { %42 = vst.msk [vmem:[#allocation2 + $0x8] sm:$0xff] %vm40_vm0, %v37_v10  ;;  %v39_v11 = vsel %vm31_vm4, %v27_v6, %v35_v9  ;;  %vm171_vm12 = vcmask 154712   ;;  %s422_s1 = smov 124   ;;  %s423_s14 = smov 125   ;;  %v205_v54 = vld [vmem:[%s566_s2] sm:$0xf] }
   0x7   :  { %44 = vst.msk [vmem:[#allocation2 + $0x18] sm:$0xff] %vm40_vm0, %v39_v11  ;;  %vm211_vm13 = vcmask 195584   ;;  %v258_v55 = vld [vmem:[%s567_s5] sm:$0xff]  ;;  %vm260_vm14 = vcmask 130048   ;;  %v424_v62 = vmov 0   ;;  %s425_s25 = smov 120  }
   0x8   :  { %161 = vst.msk [vmem:[#allocation4] sm:$0xff] %vm160_vm10, %v415_v15  ;;  %409 = vset.pattern.permute.xlu0 %v424_v62  ;;  %410 = vset.pattern.permute.xlu1 %v424_v62 }
   0xc   :  { %v90_v12 = vld [vmem:[#allocation2] sm:$0xff]  ;;  %v96_v14 = vld [vmem:[#allocation2 + $0x10] sm:$0xff] }
   0xd   :  { %92 = vrot.lane.b32.xlu0 %v90_v12, %s413_s29  ;;  %68 = vrot.lane.b32.xlu1 %v90_v12, %s414_s30  ;;  %v78_v13 = vld [vmem:[#allocation2 + $0x8] sm:$0xff]  ;;  %47 = vst.msk [vmem:[#allocation3] sm:$0xff] %vm46_vm5, %v90_v12 }
   0xe   :  { %58 = vst.msk [vmem:[#allocation3 + $0x8] sm:$0xff] %vm46_vm5, %v78_v13  ;;  %v84_v16 = vld [vmem:[#allocation2 + $0x18] sm:$0xff] }
  0x11   :  { %98 = vrot.lane.b32.xlu0 %v96_v14, %s416_s7  ;;  %80 = vrot.lane.b32.xlu1 %v78_v13, %s414_s30 }
  0x15   :  { %74 = vrot.lane.b32.xlu0 %v96_v14, %s417_s8  ;;  %86 = vrot.lane.b32.xlu1 %v84_v16, %s417_s8 }
  0x19   :  { %51 = vrot.lane.b32.xlu0 %v96_v14, %s419_s9  ;;  %62 = vrot.lane.b32.xlu1 %v84_v16, %s419_s9 }
  0x7f   :  { %v93_v17 = vpop.permute.xlu0 %92  ;;  %v69_v18 = vpop.permute.xlu1 %68 }
  0x80   :  { %95 = vst.msk [vmem:[#allocation3 + $0x20] sm:$0xff] %vm46_vm5, %v93_v17  ;;  %71 = vst.msk [vmem:[#allocation3 + $0x10] sm:$0xff] %vm46_vm5, %v69_v18  ;;  %v293_v18 = vld [vmem:[%s569_s4] sm:$0xf] }
  0x83   :  { %v99_v19 = vpop.permute.xlu0 %98  ;;  %v81_v20 = vpop.permute.xlu1 %80 }
  0x84   :  { %101 = vst.msk [vmem:[#allocation3 + $0x20] sm:$0xff] %vm54_vm7, %v99_v19 }
  0x85   :  { %83 = vst.msk [vmem:[#allocation3 + $0x18] sm:$0xff] %vm46_vm5, %v81_v20 }
  0x87   :  { %v75_v21 = vpop.permute.xlu0 %74  ;;  %v87_v22 = vpop.permute.xlu1 %86 }
  0x88   :  { %77 = vst.msk [vmem:[#allocation3 + $0x10] sm:$0xff] %vm54_vm7, %v75_v21  ;;  %89 = vst.msk [vmem:[#allocation3 + $0x18] sm:$0xff] %vm54_vm7, %v87_v22 }
  0x8b   :  { %v52_v23 = vpop.permute.xlu0 %51  ;;  %v63_v24 = vpop.permute.xlu1 %62  ;;  %v107_v25 = vld [vmem:[#allocation3 + $0x20] sm:$0xff] }
  0x8c   :  { %55 = vst.msk [vmem:[#allocation3] sm:$0xff] %vm54_vm7, %v52_v23  ;;  %65 = vst.msk [vmem:[#allocation3 + $0x8] sm:$0xff] %vm54_vm7, %v63_v24  ;;  %v110_v26 = vpack.c.bf16 %v107_v25, %v107_v25  ;;  %v316_v24 = vld [vmem:[%s564_s0] sm:$0xf] }
  0x8e   :  { %v117_v27 = vsel %vm115_vm8, %v110_v26, 0  ;;  %v368_v26 = vld [vmem:[%s564_s0 + $0x8] sm:$0xf] }
  0x8f   :  { %379 = vmatpush3.bf16.msra.mxu0 %v117_v27  ;;  %v105_v28 = vld [vmem:[#allocation3 + $0x10] sm:$0xff]  ;;  %v106_v29 = vld [vmem:[#allocation3 + $0x18] sm:$0xff] }
  0x90   :  { %380 = vmatprep.subr.bf16.mxu0 %v415_v15  ;;  %v109_v30 = vpack.c.bf16 %v106_v29, %v105_v28  ;;  %v370_v27 = vld [vmem:[%s564_s0 + $0x18] sm:$0xf] }
  0x93   :  { %381 = vmatpush3.bf16.msra.mxu0 %v109_v30  ;;  %v103_v31 = vld [vmem:[#allocation3] sm:$0xff]  ;;  %v104_v32 = vld [vmem:[#allocation3 + $0x8] sm:$0xff] }
  0x94   :  { %382 = vmatprep.subr.bf16.mxu0 %v415_v15  ;;  %v108_v33 = vpack.c.bf16 %v104_v32, %v103_v31 }
  0x97   :  { %383 = vmatpush3.bf16.msra.mxu0 %v108_v33  ;;  %v369_v33 = vld [vmem:[%s564_s0 + $0x10] sm:$0xf] }
  0x9a   :  { %385 = vmatmul.mubr.msk.bf16.vlgmr.msra.gmra.mxu0 %vm111_vm9, %v102_v34 }
 0x15a   :  { %v153_v35 = vpop.f32.mrf.mxu0 }
 0x15b   :  { %v159_v36 = vmax.f32 %v153_v35, 0.0 }
 0x15c   :  { %v386_v37 = vpop.f32.mrf.mxu0 }
 0x15d   :  { %168 = vrot.lane.b32.xlu1 %v159_v36, %s420_s12  ;;  %163 = vrot.lane.b32.xlu0 %v159_v36, %s421_s13 }
 0x15e   :  { %v156_v38 = vpop.f32.mrf.mxu0 }
 0x160   :  { %v387_v39 = vpop.f32.mrf.mxu0 }
 0x1cf   :  { %v169_v40 = vpop.permute.xlu1 %168  ;;  %v164_v41 = vpop.permute.xlu0 %163 }
 0x1d0   :  { %167 = vst.msk [vmem:[#allocation4] sm:$0xff] %vm166_vm11, %v164_v41 }
 0x1d1   :  { %172 = vst.msk [vmem:[#allocation4] sm:$0xff] %vm171_vm12, %v169_v40 }
 0x1d8   :  { %v199_v42 = vld [vmem:[#allocation4] sm:$0xff] }
 0x1d9   :  { %201 = vrot.lane.b32.xlu1 %v199_v42, %s422_s1  ;;  %195 = vrot.lane.b32.xlu0 %v199_v42, %s413_s29  ;;  %174 = vst.msk [vmem:[#allocation5] sm:$0xff] %vm46_vm5, %v199_v42 }
 0x1dd   :  { %183 = vrot.lane.b32.xlu0 %v199_v42, %s414_s30  ;;  %177 = vrot.lane.b32.xlu1 %v199_v42, %s413_s29 }
 0x1e1   :  { %189 = vrot.lane.b32.xlu0 %v199_v42, %s423_s14 }
 0x24b   :  { %v202_v43 = vpop.permute.xlu1 %201  ;;  %v196_v44 = vpop.permute.xlu0 %195 }
 0x24c   :  { %198 = vst.msk [vmem:[#allocation5 + $0x10] sm:$0xff] %vm46_vm5, %v196_v44 }
 0x24d   :  { %204 = vst.msk [vmem:[#allocation5 + $0x10] sm:$0xff] %vm54_vm7, %v202_v43 }
 0x24f   :  { %v184_v45 = vpop.permute.xlu0 %183  ;;  %v178_v46 = vpop.permute.xlu1 %177 }
 0x250   :  { %186 = vst.msk [vmem:[#allocation5 + $0x8] sm:$0xff] %vm46_vm5, %v184_v45 }
 0x251   :  { %180 = vst.msk [vmem:[#allocation5] sm:$0xff] %vm54_vm7, %v178_v46 }
 0x253   :  { %v190_v47 = vpop.permute.xlu0 %189 }
 0x254   :  { %192 = vst.msk [vmem:[#allocation5 + $0x8] sm:$0xff] %vm54_vm7, %v190_v47  ;;  %v208_v48 = vld [vmem:[#allocation5 + $0x10] sm:$0xff] }
 0x255   :  { %v210_v49 = vpack.c.bf16 %v208_v48, %v208_v48 }
 0x257   :  { %v216_v50 = vsel %vm115_vm8, %v210_v49, 0 }
 0x258   :  { %389 = vmatpush3.bf16.msra.mxu1 %v216_v50  ;;  %v206_v51 = vld [vmem:[#allocation5] sm:$0xff] }
 0x259   :  { %390 = vmatprep.subr.bf16.mxu1 %v415_v15  ;;  %v291_v15 = vld [vmem:[%s568_s3] sm:$0xf] }
 0x25b   :  { %v207_v52 = vld [vmem:[#allocation5 + $0x8] sm:$0xff] }
 0x25c   :  { %v209_v53 = vpack.c.bf16 %v207_v52, %v206_v51 }
 0x25e   :  { %391 = vmatpush3.bf16.msra.mxu1 %v209_v53 }
 0x261   :  { %393 = vmatmul.mubr.msk.bf16.vlgmr.msra.gmra.mxu1 %vm211_vm13, %v205_v54 }
 0x321   :  { %v252_v56 = vpop.f32.mrf.mxu1 }
 0x322   :  { %v259_v57 = vmul.f32 %v258_v55, %v252_v56 }
 0x323   :  { %v394_v58 = vpop.f32.mrf.mxu1 }
 0x324   :  { %v261_v59 = vsel %vm260_vm14, %v259_v57, 0.0 }
 0x325   :  { %262 = vadd.xlane.f32.xlu1 %v261_v59  ;;  %v255_v60 = vpop.f32.mrf.mxu1 }
 0x327   :  { %v395_v61 = vpop.f32.mrf.mxu1 }
 0x3ae   :  { %v263_v63 = vpop.xlane.xlu1 %262 }
 0x3af   :  { %v265_v0 = vrot.slane %v263_v63, 4 }
 0x3b1   :  { %v267_v1 = vadd.f32 %v265_v0, %v263_v63 }
 0x3b3   :  { %v268_v2 = vmul.f32 0.03125, %v267_v1 }
 0x3b5   :  { %v270_v3 = vrot.slane %v268_v2, 4 }
 0x3b7   :  { %v272_v4 = vsel %vm115_vm8, %v268_v2, %v270_v3 }
 0x3b8   :  { %275 = vperm.xlu0 %409, %v272_v4  }
 0x433   :  { %v276_v5 = vpop.permute.xlu0 %275 }
 0x434   :  { %v278_v6 = vsub.f32 %v252_v56, %v276_v5 }
 0x436   :  { %v279_v7 = vmul.f32 %v278_v6, %v258_v55 }
 0x438   :  { %v280_v8 = vmul.f32 %v279_v7, %v279_v7 }
 0x43a   :  { %v281_v9 = vsel %vm260_vm14, %v280_v8, 0.0 }
 0x43b   :  { %282 = vadd.xlane.f32.xlu0 %v281_v9 }
 0x4c4   :  { %v283_v10 = vpop.xlane.xlu0 %282 }
 0x4c5   :  { %v285_v11 = vrot.slane %v283_v10, 4 }
 0x4c7   :  { %v287_v12 = vadd.f32 %v285_v11, %v283_v10 }
 0x4c9   :  { %v288_v13 = vmul.f32 0.03125, %v287_v12 }
 0x4cb   :  { %v289_v14 = vadd.f32 1e-05, %v288_v13 }
 0x4cd   :  { %411 = vrsqrt.f32 %v289_v14 }
 0x4da   :  { %v412_v16 = vpop.eup %411 }
 0x4db   :  { %v292_v17 = vmul.f32 %v412_v16, %v291_v15 }
 0x4dd   :  { %v297_v19 = vrot.slane %v292_v17, 4  ;;  %v294_v20 = vmul.f32 %v292_v17, %v268_v2 }
 0x4df   :  { %v299_v21 = vsel %vm115_vm8, %v292_v17, %v297_v19  ;;  %v295_v22 = vsub.f32 %v293_v18, %v294_v20 }
 0x4e0   :  { %302 = vperm.xlu1 %410, %v299_v21  }
 0x4e1   :  { %v307_v23 = vrot.slane %v295_v22, 4 }
 0x4e3   :  { %v309_v25 = vsel %vm115_vm8, %v295_v22, %v307_v23 }
 0x4e4   :  { %312 = vperm.xlu0 %409, %v309_v25   ;;  %320 = vrot.lane.b32.xlu1 %v316_v24, %s414_s30 }
 0x4e8   :  { %324 = vrot.lane.b32.xlu0 %v368_v26, %s417_s8 }
 0x4ec   :  { %347 = vrot.lane.b32.xlu0 %v370_v27, %s417_s8 }
 0x55b   :  { %v303_v28 = vpop.permute.xlu1 %302 }
 0x55c   :  { %v305_v29 = vmul.f32 %v303_v28, %v252_v56 }
 0x55f   :  { %v313_v30 = vpop.permute.xlu0 %312  ;;  %v321_v34 = vpop.permute.xlu1 %320 }
 0x560   :  { %v315_v31 = vadd.f32 %v313_v30, %v305_v29 }
 0x562   :  { %351 = vrot.lane.b32.xlu1 %v315_v31, %s425_s25  ;;  %v329_v32 = vrot.slane %v315_v31, 4 }
 0x563   :  { %v325_v36 = vpop.permute.xlu0 %324 }
 0x564   :  { %v327_v42 = vsel %vm46_vm5, %v321_v34, %v325_v36 }
 0x566   :  { %330 = vrot.lane.b32.xlu1 %v329_v32, %s419_s9 }
 0x567   :  { %v348_v41 = vpop.permute.xlu0 %347 }
 0x56a   :  { %343 = vrot.lane.b32.xlu1 %v369_v33, %s414_s30 }
 0x5d4   :  { %v352_v35 = vpop.permute.xlu1 %351 }
 0x5d5   :  { %v355_v38 = vsel %vm46_vm5, %v352_v35, %v329_v32 }
 0x5d6   :  { %v357_v43 = vrot.slane %v355_v38, 4 }
 0x5d8   :  { %v331_v37 = vpop.permute.xlu1 %330 }
 0x5d9   :  { %v333_v39 = vsel %vm46_vm5, %v315_v31, %v331_v37 }
 0x5da   :  { %v335_v40 = vrot.slane %v333_v39, 4 }
 0x5dc   :  { %v337_v44 = vsel %vm115_vm8, %v327_v42, %v335_v40  ;;  %v344_v45 = vpop.permute.xlu1 %343 }
 0x5dd   :  { %360 = vst.msk [vmem:[%s570_s6] sm:$0xff] %vm260_vm14, %v337_v44  ;;  %v350_v46 = vsel %vm46_vm5, %v344_v45, %v348_v41 }
 0x5de   :  { %v359_v47 = vsel %vm115_vm8, %v350_v46, %v357_v43 }
 0x5df   :  { %361 = vst.msk [vmem:[%s570_s6 + $0x8] sm:$0xff] %vm260_vm14, %v359_v47 }

</bundles_post_ra>
